<compile_context>
chip_gen: v7x
topology: tpu7x:2x2x1
jax: 0.10.0
libtpu: 0.0.40
codegen_flags: <defaults>
</compile_context>

<pallas_src>
import jax
import jax.numpy as jnp
from jax.experimental import pallas as pl
from jax.experimental.pallas import tpu as pltpu

_NEG_INF = -1e30  # padded-label bias; exp(-1e30 - m) == 0, so log_softmax is unaffected


def _round_up(x: int, m: int) -> int:
    return ((x + m - 1) // m) * m


def _mlp_logsoftmax_kernel(x_ref, w1_ref, b1_ref, w2_ref, b2_ref, o_ref):
    # x_ref: (TB, K_pad), w1_ref: (K_pad, H_pad), b1_ref: (1, H_pad) f32
    # w2_ref: (H_pad, L_pad), b2_ref: (1, L_pad) f32, o_ref: (TB, L_pad) f32

    # encoder: x @ W1  (MXU, f32 accumulation; operands fed in their native dtype — no upcast)
    h = jnp.dot(x_ref[...], w1_ref[...], preferred_element_type=jnp.float32)
    # bias + ReLU on the VPU in f32
    h = jnp.maximum(h + b1_ref[...], 0.0)

    # classification head: h @ W2 + b2 (cast h to the weight dtype so bf16 weights stay on the
    # fast MXU path; a no-op for f32 weights)
    logits = jnp.dot(h.astype(w2_ref.dtype), w2_ref[...],
                     preferred_element_type=jnp.float32) + b2_ref[...]

    # numerically-stable log_softmax along the lane axis (max/sum -> XLU, exp/log -> EUP)
    m = jnp.max(logits, axis=-1, keepdims=True)
    shifted = logits - m
    lse = jnp.log(jnp.sum(jnp.exp(shifted), axis=-1, keepdims=True))
    o_ref[...] = (shifted - lse).astype(o_ref.dtype)


def diagnostic_classifier_forward(x, w1, b1, w2, b2, *, tile_b=256):
    """x: (B, input_dim). w1: (input_dim, h_dim). w2: (h_dim, num_labels).
    Biases b1/b2 of size h_dim / num_labels (any shape reshapeable to (1, dim)).
    Returns log_softmax logits of shape (B, num_labels) in f32."""
    B, input_dim = x.shape
    kw, h_dim = w1.shape
    hw, num_labels = w2.shape
    assert kw == input_dim and hw == h_dim

    # ---- pad every axis to hardware-friendly sizes (lane = 128, sublane = 8) ----
    K_pad = _round_up(input_dim, 128)
    H_pad = _round_up(h_dim, 128)
    L_pad = _round_up(num_labels, 128)          # lane-dense output slab
    tile_b = max(8, _round_up(int(tile_b), 8))
    tile_b = min(tile_b, _round_up(B, 8))       # don't over-pad tiny batches
    B_pad = _round_up(B, tile_b)

    x_p = jnp.zeros((B_pad, K_pad), x.dtype).at[:B, :input_dim].set(x)
    w1_p = jnp.zeros((K_pad, H_pad), w1.dtype).at[:input_dim, :h_dim].set(w1)
    w2_p = jnp.zeros((H_pad, L_pad), w2.dtype).at[:h_dim, :num_labels].set(w2)
    # biases kept in f32 (elementwise path stays f32); padded label columns get -1e30
    b1_p = jnp.zeros((1, H_pad), jnp.float32).at[:, :h_dim].set(
        b1.reshape(1, -1).astype(jnp.float32))
    b2_p = jnp.full((1, L_pad), _NEG_INF, jnp.float32).at[:, :num_labels].set(
        b2.reshape(1, -1).astype(jnp.float32))

    grid = (B_pad // tile_b,)

    cost = pl.CostEstimate(
        flops=2 * B_pad * (K_pad * H_pad + H_pad * L_pad),
        transcendentals=B_pad * L_pad + B_pad,          # exp per logit + log per row
        bytes_accessed=(x_p.size * x_p.dtype.itemsize
                        + w1_p.size * w1_p.dtype.itemsize
                        + w2_p.size * w2_p.dtype.itemsize
                        + b1_p.size * 4 + b2_p.size * 4
                        + B_pad * L_pad * 4),
    )

    out_pad = pl.pallas_call(
        _mlp_logsoftmax_kernel,
        out_shape=jax.ShapeDtypeStruct((B_pad, L_pad), jnp.float32),
        grid_spec=pltpu.PrefetchScalarGridSpec(
            num_scalar_prefetch=0,
            grid=grid,
            in_specs=[
                pl.BlockSpec((tile_b, K_pad), lambda i: (i, 0)),   # x tile
                pl.BlockSpec((K_pad, H_pad), lambda i: (0, 0)),    # W1 (resident)
                pl.BlockSpec((1, H_pad), lambda i: (0, 0)),        # b1
                pl.BlockSpec((H_pad, L_pad), lambda i: (0, 0)),    # W2 (resident)
                pl.BlockSpec((1, L_pad), lambda i: (0, 0)),        # b2
            ],
            out_specs=pl.BlockSpec((tile_b, L_pad), lambda i: (i, 0)),
        ),
        compiler_params=pltpu.CompilerParams(
            dimension_semantics=("parallel",),
            vmem_limit_bytes=64 * 1024 * 1024,
        ),
        cost_estimate=cost,
    )(x_p, w1_p, b1_p, w2_p, b2_p)

    return out_pad[:B, :num_labels]


def _reference(x, w1, b1, w2, b2):
    h = jnp.maximum(x @ w1 + b1.reshape(1, -1), 0.0)
    logits = h @ w2 + b2.reshape(1, -1)
    return jax.nn.log_softmax(logits, axis=-1)


if __name__ == "__main__":
    key = jax.random.PRNGKey(0)

    # ---- test 1: small shapes consistent with the module's forward ----
    B, input_dim, h_dim, num_labels = 8, 32, 64, 16
    kx, kw1, kb1, kw2, kb2, key = jax.random.split(key, 6)
    x = jax.random.normal(kx, (B, input_dim), dtype=jnp.float32)
    w1 = jax.random.normal(kw1, (input_dim, h_dim), dtype=jnp.float32) / jnp.sqrt(
        jnp.float32(input_dim))
    b1 = jax.random.normal(kb1, (h_dim,), dtype=jnp.float32) * 0.01
    w2 = jax.random.normal(kw2, (h_dim, num_labels), dtype=jnp.float32) / jnp.sqrt(
        jnp.float32(h_dim))
    b2 = jax.random.normal(kb2, (num_labels,), dtype=jnp.float32) * 0.01

    out = jax.block_until_ready(diagnostic_classifier_forward(x, w1, b1, w2, b2))
    ref = _reference(x, w1, b1, w2, b2)
    assert out.shape == (B, num_labels)
    assert jnp.allclose(out, ref, atol=1e-5, rtol=1e-5), "mismatch vs reference (test 1)"

    # ---- test 2: exercise batch padding + multi-tile grid + ragged feature dims ----
    B2, in2, h2, nl2 = 72, 48, 96, 10
    kx, kw1, kb1, kw2, kb2, key = jax.random.split(key, 6)
    x2 = jax.random.normal(kx, (B2, in2), dtype=jnp.float32)
    w1_2 = jax.random.normal(kw1, (in2, h2), dtype=jnp.float32) / jnp.sqrt(jnp.float32(in2))
    b1_2 = jax.random.normal(kb1, (h2,), dtype=jnp.float32) * 0.01
    w2_2 = jax.random.normal(kw2, (h2, nl2), dtype=jnp.float32) / jnp.sqrt(jnp.float32(h2))
    b2_2 = jax.random.normal(kb2, (nl2,), dtype=jnp.float32) * 0.01

    out2 = jax.block_until_ready(
        diagnostic_classifier_forward(x2, w1_2, b1_2, w2_2, b2_2, tile_b=32))
    ref2 = _reference(x2, w1_2, b1_2, w2_2, b2_2)
    assert out2.shape == (B2, nl2)
    assert jnp.allclose(out2, ref2, atol=1e-4, rtol=1e-4), "mismatch vs reference (test 2)"

    print("KERNEL_OK")
</pallas_src>

<mosaic_0001>
module attributes {stable_mosaic.version = 11 : i64} {
  func.func @_mlp_logsoftmax_kernel(%arg0: i32, %arg1: memref<8x128xf32, #tpu.memory_space<vmem>>, %arg2: memref<128x128xf32, #tpu.memory_space<vmem>>, %arg3: memref<1x128xf32, #tpu.memory_space<vmem>>, %arg4: memref<128x128xf32, #tpu.memory_space<vmem>>, %arg5: memref<1x128xf32, #tpu.memory_space<vmem>>, %arg6: memref<8x128xf32, #tpu.memory_space<vmem>>) attributes {dimension_semantics = [#tpu.dimension_semantics<parallel>], iteration_bounds = array<i64: 1>, scalar_prefetch = 0 : i64, scratch_operands = 0 : i64, tpu.core_type = #tpu.core_type<tc>, window_params = [{transform_indices = @transform_0, window_bounds = array<i64: 8, 128>}, {pipeline_mode = #tpu.pipeline_mode<synchronous>, transform_indices = @transform_1, window_bounds = array<i64: 128, 128>}, {pipeline_mode = #tpu.pipeline_mode<synchronous>, transform_indices = @transform_2, window_bounds = array<i64: 1, 128>}, {pipeline_mode = #tpu.pipeline_mode<synchronous>, transform_indices = @transform_3, window_bounds = array<i64: 128, 128>}, {pipeline_mode = #tpu.pipeline_mode<synchronous>, transform_indices = @transform_4, window_bounds = array<i64: 1, 128>}, {transform_indices = @transform_5, window_bounds = array<i64: 8, 128>}]} {
    %c0 = arith.constant 0 : index
    %c0_0 = arith.constant 0 : index
    %0 = vector.load %arg1[%c0, %c0_0] : memref<8x128xf32, #tpu.memory_space<vmem>>, vector<8x128xf32>
    %c0_1 = arith.constant 0 : index
    %c0_2 = arith.constant 0 : index
    %1 = vector.load %arg2[%c0_1, %c0_2] : memref<128x128xf32, #tpu.memory_space<vmem>>, vector<128x128xf32>
    %cst = arith.constant dense<0.000000e+00> : vector<8x128xf32>
    %2 = tpu.matmul %0, %1, %cst {dimension_numbers = #tpu.dot_dimension_numbers<[1], [0], [0], [1], [0, 0, 1, 1], [], []>} : vector<8x128xf32>, vector<128x128xf32>, vector<8x128xf32> -> vector<8x128xf32>
    %c0_3 = arith.constant 0 : index
    %c0_4 = arith.constant 0 : index
    %3 = vector.load %arg3[%c0_3, %c0_4] : memref<1x128xf32, #tpu.memory_space<vmem>>, vector<1x128xf32>
    %4 = vector.broadcast %3 : vector<1x128xf32> to vector<8x128xf32>
    %5 = arith.addf %2, %4 : vector<8x128xf32>
    %cst_5 = arith.constant 0.000000e+00 : f32
    %6 = vector.broadcast %cst_5 : f32 to vector<8x128xf32>
    %7 = arith.maximumf %5, %6 : vector<8x128xf32>
    %c0_6 = arith.constant 0 : index
    %c0_7 = arith.constant 0 : index
    %8 = vector.load %arg4[%c0_6, %c0_7] : memref<128x128xf32, #tpu.memory_space<vmem>>, vector<128x128xf32>
    %cst_8 = arith.constant dense<0.000000e+00> : vector<8x128xf32>
    %9 = tpu.matmul %7, %8, %cst_8 {dimension_numbers = #tpu.dot_dimension_numbers<[1], [0], [0], [1], [0, 0, 1, 1], [], []>} : vector<8x128xf32>, vector<128x128xf32>, vector<8x128xf32> -> vector<8x128xf32>
    %c0_9 = arith.constant 0 : index
    %c0_10 = arith.constant 0 : index
    %10 = vector.load %arg5[%c0_9, %c0_10] : memref<1x128xf32, #tpu.memory_space<vmem>>, vector<1x128xf32>
    %11 = vector.broadcast %10 : vector<1x128xf32> to vector<8x128xf32>
    %12 = arith.addf %9, %11 : vector<8x128xf32>
    %cst_11 = arith.constant dense<0xFF800000> : vector<8xf32>
    %13 = vector.multi_reduction <maximumf>, %12, %cst_11 [1] : vector<8x128xf32> to vector<8xf32>
    %14 = vector.shape_cast %13 : vector<8xf32> to vector<8x1xf32>
    %15 = vector.broadcast %14 : vector<8x1xf32> to vector<8x128xf32>
    %16 = arith.subf %12, %15 : vector<8x128xf32>
    %17 = math.exp %16 : vector<8x128xf32>
    %cst_12 = arith.constant dense<0.000000e+00> : vector<8xf32>
    %18 = vector.multi_reduction <add>, %17, %cst_12 [1] : vector<8x128xf32> to vector<8xf32>
    %19 = vector.shape_cast %18 : vector<8xf32> to vector<8x1xf32>
    %20 = math.log %19 : vector<8x1xf32>
    %21 = vector.broadcast %20 : vector<8x1xf32> to vector<8x128xf32>
    %22 = arith.subf %16, %21 : vector<8x128xf32>
    %c0_13 = arith.constant 0 : index
    %c0_14 = arith.constant 0 : index
    %23 = vector.load %arg6[%c0_13, %c0_14] : memref<8x128xf32, #tpu.memory_space<vmem>>, vector<8x128xf32>
    tpu.vector_store %arg6[%c0_13, %c0_14], %22 {strides = array<i32>} : memref<8x128xf32, #tpu.memory_space<vmem>>, vector<8x128xf32>,
    return
  }
  func.func @transform_0(%arg0: i32) -> (i32, i32) {
    %c0_i32 = arith.constant 0 : i32
    %c0_i32_0 = arith.constant 0 : i32
    return %arg0, %c0_i32 : i32, i32
  }
  func.func @transform_1(%arg0: i32) -> (i32, i32) {
    %c0_i32 = arith.constant 0 : i32
    %c0_i32_0 = arith.constant 0 : i32
    %c0_i32_1 = arith.constant 0 : i32
    return %c0_i32, %c0_i32_0 : i32, i32
  }
  func.func @transform_2(%arg0: i32) -> (i32, i32) {
    %c0_i32 = arith.constant 0 : i32
    %c0_i32_0 = arith.constant 0 : i32
    %c0_i32_1 = arith.constant 0 : i32
    return %c0_i32, %c0_i32_0 : i32, i32
  }
  func.func @transform_3(%arg0: i32) -> (i32, i32) {
    %c0_i32 = arith.constant 0 : i32
    %c0_i32_0 = arith.constant 0 : i32
    %c0_i32_1 = arith.constant 0 : i32
    return %c0_i32, %c0_i32_0 : i32, i32
  }
  func.func @transform_4(%arg0: i32) -> (i32, i32) {
    %c0_i32 = arith.constant 0 : i32
    %c0_i32_0 = arith.constant 0 : i32
    %c0_i32_1 = arith.constant 0 : i32
    return %c0_i32, %c0_i32_0 : i32, i32
  }
  func.func @transform_5(%arg0: i32) -> (i32, i32) {
    %c0_i32 = arith.constant 0 : i32
    %c0_i32_0 = arith.constant 0 : i32
    return %arg0, %c0_i32 : i32, i32
  }
}

</mosaic_0001>

<bundles_post_ra>
// kernel: tpu_custom_call.1
= control target key start
LH: loop header
LB: loop body
LE: loop exit
PB: predicated region body
PF: predicated region fallthrough
CT: control target
= control target key end

     0   :  { %10 = vsyncpa [#allocation3], 0  ;;  %s737_s0 = inlined_call_operand.hbm [shape: f32[8,128], index: 0, kind: input, shape index: {}]   ;;  %s738_s1 = inlined_call_operand.hbm [shape: f32[128,128], index: 1, kind: input, shape index: {}]   ;;  %s739_s2 = inlined_call_operand.hbm [shape: f32[1,128], index: 2, kind: input, shape index: {}]   ;;  %s740_s3 = inlined_call_operand.hbm [shape: f32[128,128], index: 3, kind: input, shape index: {}]   ;;  %s741_s4 = inlined_call_operand.hbm [shape: f32[1,128], index: 4, kind: input, shape index: {}]   ;;  %s742_s5 = inlined_call_operand.hbm [shape: f32[8,128], index: 5, kind: output, shape index: {}]  }
   0x1   :  { %11 = vsyncpa [#allocation6], 0 }
   0x2   :  { %12 = vsyncpa [#allocation9], 0 }
   0x3   :  { %13 = vsyncpa [#allocation4], 0  ;;  %s608_s18 = smov [#allocation5]   ;;  %s468_s22 = scalar_lea.hbm %s738_s1, 2048 }
   0x4   :  { %s29_s19 = sshll.u32 %s608_s18, 4  ;;  %p469_p0 = scmp.ne.s32.totalorder %s738_s1, %s468_s22  ;;  %s30_s19 = int_to_ptr.vmem [resolvable:$true] %s29_s19 }
   0x5   :  { %p472_p1 = scmp.lt.u32.totalorder %s468_s22, %s738_s1 }
   0x7   :  { %p474_p2 = pnand %p472_p1, %p469_p0 }
   0x9   :  { %477 = shalt.err (!%p474_p2)
}
   0xa   :  { %s478_s27 = scalar_lea.vmem %s30_s19, 2048  ;;  %p483_p4 = scmp.lt.s32.totalorder %s30_s19, %s30_s19 }
   0xb   :  { %p479_p3 = scmp.ne.s32.totalorder %s30_s19, %s478_s27  ;;  %p484_p5 = scmp.lt.s32.totalorder %s478_s27, %s478_s27 }
   0xd   :  { %p485_p6 = por %p484_p5, %p483_p4 }
   0xf   :  { %p486_p7 = pnand %p485_p6, %p479_p3 }
  0x11   :  { %489 = shalt.err (!%p486_p7)
}
  0x12   :  { %s609_s28 = smov 128   ;;  %s610_s29 = smov 8  }
  0x13   :  { %35 = dma.hbm_to_vmem [thread:$0]  %s738_s1, 2048, %s30_s19, [#allocation6], %s609_s28, %s609_s28, %s610_s29  }
  0x14   :  { %s611_s7 = smov [#allocation8]   ;;  %s612_s9 = smov [#allocation2]  }
  0x15   :  { %s51_s8 = sshll.u32 %s611_s7, 4  ;;  %s20_s10 = sshll.u32 %s612_s9, 4  ;;  %s52_s8 = int_to_ptr.vmem [resolvable:$true] %s51_s8  ;;  %s21_s10 = int_to_ptr.vmem [resolvable:$true] %s20_s10 }
  0x16   :  { %s490_s13 = scalar_lea.hbm %s740_s3, 2048 }
  0x17   :  { %p491_p8 = scmp.ne.s32.totalorder %s740_s3, %s490_s13  ;;  %p494_p9 = scmp.lt.u32.totalorder %s490_s13, %s740_s3 }
  0x19   :  { %p496_p10 = pnand %p494_p9, %p491_p8 }
  0x1b   :  { %499 = shalt.err (!%p496_p10)
}
  0x1c   :  { %s500_s1 = scalar_lea.vmem %s52_s8, 2048  ;;  %p505_p12 = scmp.lt.s32.totalorder %s52_s8, %s52_s8 }
  0x1d   :  { %p501_p11 = scmp.ne.s32.totalorder %s52_s8, %s500_s1  ;;  %p506_p13 = scmp.lt.s32.totalorder %s500_s1, %s500_s1 }
  0x1f   :  { %p507_p0 = por %p506_p13, %p505_p12 }
  0x21   :  { %p508_p1 = pnand %p507_p0, %p501_p11 }
  0x23   :  { %511 = shalt.err (!%p508_p1)
}
  0x24   :  { %57 = dma.hbm_to_vmem [thread:$0]  %s740_s3, 2048, %s52_s8, [#allocation9], %s609_s28, %s609_s28, %s610_s29  }
  0x25   :  { %s512_s22 = scalar_lea.hbm %s737_s0, 128 }
  0x26   :  { %p513_p2 = scmp.ne.s32.totalorder %s737_s0, %s512_s22  ;;  %p516_p3 = scmp.lt.u32.totalorder %s512_s22, %s737_s0 }
  0x28   :  { %p518_p4 = pnand %p516_p3, %p513_p2 }
  0x2a   :  { %521 = shalt.err (!%p518_p4)
}
  0x2b   :  { %s522_s27 = scalar_lea.vmem %s21_s10, 128  ;;  %p527_p6 = scmp.lt.s32.totalorder %s21_s10, %s21_s10 }
  0x2c   :  { %p523_p5 = scmp.ne.s32.totalorder %s21_s10, %s522_s27  ;;  %p528_p7 = scmp.lt.s32.totalorder %s522_s27, %s522_s27 }
  0x2e   :  { %p529_p8 = por %p528_p7, %p527_p6 }
  0x30   :  { %p530_p9 = pnand %p529_p8, %p523_p5 }
  0x32   :  { %533 = shalt.err (!%p530_p9)
}
  0x33   :  { %23 = dma.hbm_to_vmem [thread:$0]  %s737_s0, 128, %s21_s10, [#allocation3]  }
  0x34   :  { %s613_s29 = smov [#allocation7]   ;;  %s614_s6 = smov [#allocation10]  }
  0x35   :  { %s42_s30 = sshll.u32 %s613_s29, 4  ;;  %s64_s7 = sshll.u32 %s614_s6, 4  ;;  %s43_s30 = int_to_ptr.vmem [resolvable:$true] %s42_s30  ;;  %s65_s7 = int_to_ptr.vmem [resolvable:$true] %s64_s7 }
  0x36   :  { %s534_s11 = scalar_lea.hbm %s739_s2, 16 }
  0x37   :  { %p535_p10 = scmp.ne.s32.totalorder %s739_s2, %s534_s11  ;;  %p538_p11 = scmp.lt.u32.totalorder %s534_s11, %s739_s2 }
  0x39   :  { %p540_p12 = pnand %p538_p11, %p535_p10 }
  0x3b   :  { %543 = shalt.err (!%p540_p12)
}
  0x3c   :  { %s544_s0 = scalar_lea.vmem %s43_s30, 16  ;;  %s548_s10 = scalar_lea.vmem %s43_s30, 32 }
  0x3d   :  { %p545_p13 = scmp.ne.s32.totalorder %s43_s30, %s544_s0  ;;  %p549_p0 = scmp.lt.s32.totalorder %s43_s30, %s43_s30 }
  0x3e   :  { %p550_p1 = scmp.lt.s32.totalorder %s548_s10, %s544_s0 }
  0x40   :  { %p551_p2 = por %p550_p1, %p549_p0 }
  0x42   :  { %p552_p3 = pnand %p551_p2, %p545_p13 }
  0x44   :  { %555 = shalt.err (!%p552_p3)
}
  0x45   :  { %45 = dma.hbm_to_vmem [thread:$0]  %s739_s2, 16, %s43_s30, [#allocation6]  }
  0x46   :  { %s556_s19 = scalar_lea.hbm %s741_s4, 16 }
  0x47   :  { %p557_p4 = scmp.ne.s32.totalorder %s741_s4, %s556_s19  ;;  %p560_p5 = scmp.lt.u32.totalorder %s556_s19, %s741_s4 }
  0x49   :  { %p562_p6 = pnand %p560_p5, %p557_p4 }
  0x4b   :  { %565 = shalt.err (!%p562_p6)
}
  0x4c   :  { %s566_s24 = scalar_lea.vmem %s65_s7, 16  ;;  %s570_s25 = scalar_lea.vmem %s65_s7, 32 }
  0x4d   :  { %p567_p7 = scmp.ne.s32.totalorder %s65_s7, %s566_s24  ;;  %p571_p8 = scmp.lt.s32.totalorder %s65_s7, %s65_s7 }
  0x4e   :  { %p572_p9 = scmp.lt.s32.totalorder %s570_s25, %s566_s24 }
  0x50   :  { %p573_p10 = por %p572_p9, %p571_p8 }
  0x52   :  { %p574_p11 = pnand %p573_p10, %p567_p7 }
  0x54   :  { %577 = shalt.err (!%p574_p11)
}
  0x55   :  { %67 = dma.hbm_to_vmem [thread:$0]  %s741_s4, 16, %s65_s7, [#allocation9]  }
  0x56   :  { %600 = dma.done.wait [#allocation3], 128  }
  0x57   :  { %601 = vsyncadd [#allocation3], 4294967168 }
  0x58   :  { %602 = dma.done.wait [#allocation6], 2064  }
  0x59   :  { %603 = vsyncadd [#allocation6], 4294965232 }
  0x5a   :  { %604 = dma.done.wait [#allocation9], 2064  }
  0x5b   :  { %605 = vsyncadd [#allocation9], 4294965232  ;;  %v615_v0 = vmov 0.0|0.0   ;;  %vm616_vm0 = vmmov 0   ;;  %v617_v1 = vmov 0.0   ;;  %v84_v2 = vld [vmem:[#allocation5] sm:$0xff] }
  0x5c   :  { %405 = vmatprep.subr.bf16.mxu0 %v615_v0  ;;  %367 = vmatprep.mubr.msk.f32.mxu0 %vm616_vm0, %v617_v1  ;;  %v85_v3 = vld [vmem:[#allocation5 + $0x8] sm:$0xff]  ;;  %v86_v4 = vld [vmem:[#allocation5 + $0x10] sm:$0xff]  ;;  %v87_v6 = vld [vmem:[#allocation5 + $0x18] sm:$0xff]  ;;  %s618_s4 = smov [#allocation11]  }
  0x5d   :  { %429 = vmatprep.subr.bf16.mxu1 %v615_v0  ;;  %402 = vmatprep.mubr.msk.f32.mxu1 %vm616_vm0, %v617_v1  ;;  %v406_v5 = vpack.c.bf16 %v85_v3, %v84_v2  ;;  %v409_v7 = vpack.c.bf16 %v87_v6, %v86_v4  ;;  %v88_v8 = vld [vmem:[#allocation5 + $0x20] sm:$0xff]  ;;  %v89_v9 = vld [vmem:[#allocation5 + $0x28] sm:$0xff]  ;;  %v180_v12 = vld [vmem:[#allocation8 + $0x10] sm:$0xff]  ;;  %s288_s27 = sshll.u32 %s618_s4, 4  ;;  %s289_s27 = int_to_ptr.vmem [resolvable:$true] %s288_s27 }
  0x5e   :  { %v178_v10 = vld [vmem:[#allocation8] sm:$0xff]  ;;  %v179_v11 = vld [vmem:[#allocation8 + $0x8] sm:$0xff]  ;;  %v181_v13 = vld [vmem:[#allocation8 + $0x18] sm:$0xff]  ;;  %v412_v14 = vpack.c.bf16 %v89_v9, %v88_v8  ;;  %s578_s3 = scalar_lea.vmem %s289_s27, 128  ;;  %p583_p13 = scmp.lt.s32.totalorder %s289_s27, %s289_s27 }
  0x5f   :  { %407 = vmatpush3.bf16.msra.mxu0 %v406_v5  ;;  %v430_v15 = vpack.c.bf16 %v179_v11, %v178_v10  ;;  %v90_v16 = vld [vmem:[#allocation5 + $0x30] sm:$0xff]  ;;  %v91_v17 = vld [vmem:[#allocation5 + $0x38] sm:$0xff]  ;;  %v433_v18 = vpack.c.bf16 %v181_v13, %v180_v12  ;;  %v182_v19 = vld [vmem:[#allocation8 + $0x20] sm:$0xff]  ;;  %p579_p12 = scmp.ne.s32.totalorder %s289_s27, %s578_s3  ;;  %p584_p0 = scmp.lt.s32.totalorder %s578_s3, %s578_s3 }
  0x60   :  { %408 = vmatprep.subr.bf16.mxu0 %v615_v0  ;;  %v183_v20 = vld [vmem:[#allocation8 + $0x28] sm:$0xff]  ;;  %v415_v21 = vpack.c.bf16 %v91_v17, %v90_v16  ;;  %v92_v22 = vld [vmem:[#allocation5 + $0x40] sm:$0xff]  ;;  %v184_v25 = vld [vmem:[#allocation8 + $0x30] sm:$0xff] }
  0x61   :  { %431 = vmatpush3.bf16.msra.mxu1 %v430_v15  ;;  %v93_v23 = vld [vmem:[#allocation5 + $0x48] sm:$0xff]  ;;  %v436_v24 = vpack.c.bf16 %v183_v20, %v182_v19  ;;  %v185_v26 = vld [vmem:[#allocation8 + $0x38] sm:$0xff]  ;;  %v94_v28 = vld [vmem:[#allocation5 + $0x50] sm:$0xff]  ;;  %p585_p1 = por %p584_p0, %p583_p13 }
  0x62   :  { %432 = vmatprep.subr.bf16.mxu1 %v615_v0  ;;  %v418_v27 = vpack.c.bf16 %v93_v23, %v92_v22  ;;  %v95_v29 = vld [vmem:[#allocation5 + $0x58] sm:$0xff]  ;;  %v439_v30 = vpack.c.bf16 %v185_v26, %v184_v25  ;;  %v186_v31 = vld [vmem:[#allocation8 + $0x40] sm:$0xff]  ;;  %v187_v32 = vld [vmem:[#allocation8 + $0x48] sm:$0xff] }
  0x63   :  { %410 = vmatpush3.bf16.msra.mxu0 %v409_v7  ;;  %v421_v33 = vpack.c.bf16 %v95_v29, %v94_v28  ;;  %v96_v34 = vld [vmem:[#allocation5 + $0x60] sm:$0xff]  ;;  %v97_v35 = vld [vmem:[#allocation5 + $0x68] sm:$0xff]  ;;  %v442_v36 = vpack.c.bf16 %v187_v32, %v186_v31  ;;  %v188_v37 = vld [vmem:[#allocation8 + $0x50] sm:$0xff]  ;;  %p586_p2 = pnand %p585_p1, %p579_p12 }
  0x64   :  { %411 = vmatprep.subr.bf16.mxu0 %v615_v0  ;;  %v189_v38 = vld [vmem:[#allocation8 + $0x58] sm:$0xff]  ;;  %v424_v39 = vpack.c.bf16 %v97_v35, %v96_v34  ;;  %v98_v40 = vld [vmem:[#allocation5 + $0x70] sm:$0xff]  ;;  %v190_v43 = vld [vmem:[#allocation8 + $0x60] sm:$0xff] }
  0x65   :  { %434 = vmatpush3.bf16.msra.mxu1 %v433_v18  ;;  %v99_v41 = vld [vmem:[#allocation5 + $0x78] sm:$0xff]  ;;  %v445_v42 = vpack.c.bf16 %v189_v38, %v188_v37  ;;  %v191_v44 = vld [vmem:[#allocation8 + $0x68] sm:$0xff]  ;;  %v299_v51 = vld [vmem:[#allocation7] ss:$0 sm:$0xff] }
  0x66   :  { %435 = vmatprep.subr.bf16.mxu1 %v615_v0  ;;  %v427_v45 = vpack.c.bf16 %v99_v41, %v98_v40  ;;  %v448_v46 = vpack.c.bf16 %v191_v44, %v190_v43  ;;  %v83_v47 = vld [vmem:[#allocation2] sm:$0xff]  ;;  %v300_v56 = vld [vmem:[#allocation10] ss:$0 sm:$0xff] }
  0x67   :  { %413 = vmatpush3.bf16.msra.mxu0 %v412_v14  ;;  %v192_v48 = vld [vmem:[#allocation8 + $0x70] sm:$0xff]  ;;  %v193_v49 = vld [vmem:[#allocation8 + $0x78] sm:$0xff] }
  0x68   :  { %414 = vmatprep.subr.bf16.mxu0 %v615_v0  ;;  %v451_v50 = vpack.c.bf16 %v193_v49, %v192_v48 }
  0x69   :  { %437 = vmatpush3.bf16.msra.mxu1 %v436_v24 }
  0x6a   :  { %438 = vmatprep.subr.bf16.mxu1 %v615_v0 }
  0x6b   :  { %416 = vmatpush3.bf16.msra.mxu0 %v415_v21 }
  0x6c   :  { %417 = vmatprep.subr.bf16.mxu0 %v615_v0 }
  0x6d   :  { %440 = vmatpush3.bf16.msra.mxu1 %v439_v30 }
  0x6e   :  { %441 = vmatprep.subr.bf16.mxu1 %v615_v0 }
  0x6f   :  { %419 = vmatpush3.bf16.msra.mxu0 %v418_v27 }
  0x70   :  { %420 = vmatprep.subr.bf16.mxu0 %v615_v0 }
  0x71   :  { %443 = vmatpush3.bf16.msra.mxu1 %v442_v36 }
  0x72   :  { %444 = vmatprep.subr.bf16.mxu1 %v615_v0 }
  0x73   :  { %422 = vmatpush3.bf16.msra.mxu0 %v421_v33 }
  0x74   :  { %423 = vmatprep.subr.bf16.mxu0 %v615_v0 }
  0x75   :  { %446 = vmatpush3.bf16.msra.mxu1 %v445_v42 }
  0x76   :  { %447 = vmatprep.subr.bf16.mxu1 %v615_v0 }
  0x77   :  { %425 = vmatpush3.bf16.msra.mxu0 %v424_v39 }
  0x78   :  { %426 = vmatprep.subr.bf16.mxu0 %v615_v0 }
  0x79   :  { %449 = vmatpush3.bf16.msra.mxu1 %v448_v46 }
  0x7a   :  { %450 = vmatprep.subr.bf16.mxu1 %v615_v0 }
  0x7b   :  { %428 = vmatpush3.bf16.msra.mxu0 %v427_v45 }
  0x7d   :  { %452 = vmatpush3.bf16.msra.mxu1 %v451_v50 }
  0x7e   :  { %368 = vmatmul.mubr.f32.vlgmr.msra.gmra.mrb[0].mxu0 %v83_v47 }
 0x151   :  { %v173_v52 = vpop.f32.mrb[0].mxu0 }
 0x152   :  { %v174_v53 = vadd.f32 %v299_v51, %v173_v52  ;;  %v369_v54 = vpop.f32.mrb[1].mxu0 }
 0x154   :  { %v177_v55 = vmax.f32 %v174_v53, 0.0 }
 0x156   :  { %403 = vmatmul.mubr.f32.vlgmr.msra.gmra.mrb[0].mxu1 %v177_v55 }
 0x229   :  { %v267_v57 = vpop.f32.mrb[0].mxu1 }
 0x22a   :  { %v268_v58 = vadd.f32 %v300_v56, %v267_v57  ;;  %v404_v59 = vpop.f32.mrb[1].mxu1 }
 0x22c   :  { %271 = vmax.xlane.f32.xlu0 %v268_v58 }
 0x2b9   :  { %v272_v60 = vpop.xlane.xlu0 %271 }
 0x2ba   :  { %v273_v61 = vsub.f32 %v268_v58, %v272_v60 }
 0x2bc   :  { %v274_v62 = vmul.f32 1.442695, %v273_v61 }
 0x2be   :  { %464 = vpow2.f32 %v274_v62 }
 0x2c8   :  { %v465_v63 = vpop.eup %464 }
 0x2c9   :  { %276 = vadd.xlane.f32.xlu0 %v465_v63 }
 0x356   :  { %v277_v0 = vpop.xlane.xlu0 %276 }
 0x357   :  { %466 = vlog2.f32 %v277_v0 }
 0x361   :  { %v467_v1 = vpop.eup %466 }
 0x362   :  { %v279_v2 = vmul.f32 0.6931472, %v467_v1 }
 0x364   :  { %v280_v3 = vsub.f32 %v273_v61, %v279_v2 }
 0x366   :  { %281 = vst [vmem:[#allocation11] sm:$0xff] %v280_v3 }
 0x367   :  { %589 = shalt.err (!%p586_p2)
}
 0x368   :  { %s590_s30 = scalar_lea.hbm %s742_s5, 128 }
 0x369   :  { %p591_p3 = scmp.ne.s32.totalorder %s742_s5, %s590_s30  ;;  %p594_p4 = scmp.lt.u32.totalorder %s590_s30, %s742_s5 }
 0x36b   :  { %p596_p5 = pnand %p594_p4, %p591_p3 }
 0x36d   :  { %599 = shalt.err (!%p596_p5)
}
 0x36e   :  { %291 = dma.vmem_to_hbm [thread:$0]  %s289_s27, 128, %s742_s5, [#allocation4]  }
 0x36f   :  { %606 = dma.done.wait [#allocation4], 128  }
 0x370   :  { %607 = vsyncadd [#allocation4], 4294967168 }
 0x371   :  { %295 = vsyncpa [#allocation3], 1 }
 0x372   :  { %296 = vsyncpa [#allocation6], 1 }
 0x373   :  { %297 = vsyncpa [#allocation9], 1 }
 0x374   :  { %298 = vsyncpa [#allocation4], 1 }

</bundles_post_ra>
